<compile_context>
chip_gen: v6e
topology: v6e:2x2x1
jax: 0.10.0
libtpu: 0.0.40
codegen_flags: <defaults>
</compile_context>

<pallas_src>
import jax
import jax.numpy as jnp
from jax.experimental import pallas as pl
from jax.experimental.pallas import tpu as pltpu

BN_EPS = 1e-5
H1, H2 = 400, 300          # PyTorch hidden_dims
H1_PAD, H2_PAD = 512, 384  # padded to lane multiples of 128 (keep 384: not MXU-bound)
SUBLANE = 16               # bf16 sublane packing -> batch tiles are multiples of 16
B_TILE_MAX = 512           # large tiles amortize the ~0.35 us per-grid-step overhead


def _round_up(n, m):
    return ((n + m - 1) // m) * m


def draftnet_kernel(x_ref, pack_ref, w1_ref, w2_ref, w3_ref, bias_ref, out_ref):
    # Static lane slices of the fused bias row vector (offsets are multiples of 128).
    b1 = bias_ref[:, :H1_PAD]
    b2 = bias_ref[:, H1_PAD:H1_PAD + H2_PAD]
    b3 = bias_ref[:, H1_PAD + H2_PAD:]

    # Input layer: x arrives in bf16; f32 accumulation on the MXU.
    # Dropout is identity in eval mode.
    h = jnp.dot(x_ref[...], w1_ref[...], preferred_element_type=jnp.float32) + b1
    # tanh-GELU: transcendental runs on the EUP slot; elementwise math stays f32.
    h = jax.nn.gelu(h, approximate=True)

    # Hidden layer + GELU. Eval-mode BatchNorm1d (running stats) is folded into
    # w3 / b3 at param-prep time, so nothing to do here.
    h = jnp.dot(h.astype(jnp.bfloat16), w2_ref[...], preferred_element_type=jnp.float32) + b2
    h = jax.nn.gelu(h, approximate=True)

    # Output layer (BN-folded weights), then elementwise mask by the pack.
    o = jnp.dot(h.astype(jnp.bfloat16), w3_ref[...], preferred_element_type=jnp.float32) + b3
    out_ref[...] = o * pack_ref[...].astype(jnp.float32)


def _choose_tiling(B, b_tile_max=B_TILE_MAX):
    """Pick (b_tile, Bp, n_tiles): tiles <= b_tile_max rows, mostly-full last tile,
    and >= 2 grid steps whenever the batch allows (so v7x can use both TCs)."""
    n_tiles = max(1, pl.cdiv(B, b_tile_max))
    if n_tiles == 1 and B > SUBLANE:
        n_tiles = 2                      # give the v7x megacore something to split
    b_tile = _round_up(pl.cdiv(B, n_tiles), SUBLANE)
    return b_tile, n_tiles * b_tile, n_tiles


def draftnet_forward(x, pack, kernel_params):
    """Batch-gridded forward. Weights stay VMEM-resident across batch tiles.
    x/pack may be f32; they are streamed to the kernel in bf16."""
    w1, w2, w3, bias = kernel_params
    B, C = x.shape
    assert C % 128 == 0, "pad n_cards to a multiple of 128 (lane width)"

    # bf16 input streams (x is cast at the first dot anyway; pack is a 0/1 mask).
    x = x.astype(jnp.bfloat16)
    pack = pack.astype(jnp.bfloat16)

    b_tile, Bp, n_tiles = _choose_tiling(B)
    if Bp != B:
        x = jnp.pad(x, ((0, Bp - B), (0, 0)))
        pack = jnp.pad(pack, ((0, Bp - B), (0, 0)))

    flops = 2 * Bp * (C * H1_PAD + H1_PAD * H2_PAD + H2_PAD * C)
    transcendentals = Bp * (H1_PAD + H2_PAD)            # one tanh per GELU element
    bytes_accessed = (2 * (w1.size + w2.size + w3.size)  # bf16 weights
                      + 4 * bias.size                    # f32 fused biases
                      + 2 * (2 * Bp * C)                 # x, pack (bf16)
                      + 4 * (Bp * C))                    # out (f32)

    in_row_spec = pl.BlockSpec((b_tile, C), lambda i: (i, 0))
    out_row_spec = pl.BlockSpec((b_tile, C), lambda i: (i, 0))

    def resident(shape):
        # Constant block index -> stays in VMEM across all grid steps.
        return pl.BlockSpec(shape, lambda i: (0, 0))

    out = pl.pallas_call(
        draftnet_kernel,
        out_shape=jax.ShapeDtypeStruct((Bp, C), jnp.float32),
        grid=(n_tiles,),
        in_specs=[in_row_spec, in_row_spec,
                  resident(w1.shape), resident(w2.shape),
                  resident(w3.shape), resident(bias.shape)],
        out_specs=out_row_spec,
        compiler_params=pltpu.CompilerParams(
            dimension_semantics=("parallel",)),   # v7x: shard batch tiles over 2 TCs
        cost_estimate=pl.CostEstimate(flops=flops,
                                      transcendentals=transcendentals,
                                      bytes_accessed=bytes_accessed),
    )(x, pack, w1, w2, w3, bias)
    return out[:B]


def init_params(key, n_cards, h1=H1, h2=H2):
    """Deterministic PyTorch-style init; returns the un-padded f32 parameters."""
    ks = jax.random.split(key, 5)

    def linear(k, fan_in, fan_out):
        kw, kb = jax.random.split(k)
        bound = 1.0 / jnp.sqrt(float(fan_in))
        w = jax.random.uniform(kw, (fan_in, fan_out), jnp.float32, -bound, bound)
        b = jax.random.uniform(kb, (1, fan_out), jnp.float32, -bound, bound)
        return w, b

    w1, b1 = linear(ks[0], n_cards, h1)
    w2, b2 = linear(ks[1], h1, h2)
    w3, b3 = linear(ks[2], h2, n_cards)
    gamma = jnp.ones((1, h2), jnp.float32)
    beta = jnp.zeros((1, h2), jnp.float32)
    mean = 0.1 * jax.random.normal(ks[3], (1, h2), jnp.float32)
    var = 1.0 + 0.1 * jax.random.uniform(ks[4], (1, h2), jnp.float32)
    return (w1, b1, w2, b2, gamma, beta, mean, var, w3, b3)


def prepare_kernel_params(real_params, n_cards):
    """Fold eval-mode BatchNorm into w3/b3, pad hidden dims, cast weights to bf16,
    and fuse the bias row-vectors into one f32 array."""
    w1, b1, w2, b2, gamma, beta, mean, var, w3, b3 = real_params

    # Fold BN (applied after GELU, before the output layer) into w3 / b3, in f32.
    s = gamma / jnp.sqrt(var + BN_EPS)                 # (1, h2)
    w3f = w3 * s.T                                     # scale rows of w3
    b3f = b3 + (beta - mean * s) @ w3                  # (1, n_cards)

    def pad2(a, rows, cols):
        return jnp.pad(a, ((0, rows - a.shape[0]), (0, cols - a.shape[1])))

    w1p = pad2(w1, n_cards, H1_PAD).astype(jnp.bfloat16)
    w2p = pad2(w2, H1_PAD, H2_PAD).astype(jnp.bfloat16)
    w3p = pad2(w3f, H2_PAD, n_cards).astype(jnp.bfloat16)

    bias = jnp.concatenate([pad2(b1, 1, H1_PAD),
                            pad2(b2, 1, H2_PAD),
                            b3f], axis=1)              # (1, 512+384+n_cards), f32
    return (w1p, w2p, w3p, bias)


def reference_module_f32(x, pack, p):
    """Pure-f32 eval-mode forward of the original PyTorch module (exact-erf GELU)."""
    w1, b1, w2, b2, gamma, beta, mean, var, w3, b3 = p
    h = jax.nn.gelu(x @ w1 + b1, approximate=False)
    h = jax.nn.gelu(h @ w2 + b2, approximate=False)
    h = (h - mean) / jnp.sqrt(var + BN_EPS) * gamma + beta
    return (h @ w3 + b3) * pack


def reference_kernel_path(x_bf16, pack, kernel_params):
    """Mirrors the kernel's exact numeric path (bf16 dot operands, f32 accumulate,
    tanh-GELU, BN folded) for a tight comparison."""
    w1, w2, w3, bias = kernel_params
    b1 = bias[:, :H1_PAD]
    b2 = bias[:, H1_PAD:H1_PAD + H2_PAD]
    b3 = bias[:, H1_PAD + H2_PAD:]

    def mm(a, w):
        return jnp.dot(a.astype(jnp.bfloat16), w, preferred_element_type=jnp.float32)

    h = jax.nn.gelu(mm(x_bf16, w1) + b1, approximate=True)
    h = jax.nn.gelu(mm(h, w2) + b2, approximate=True)
    return (mm(h, w3) + b3) * pack.astype(jnp.bfloat16).astype(jnp.float32)


if __name__ == "__main__":
    key = jax.random.PRNGKey(0)
    n_cards = 256   # len(cardnames) for this synthetic set (multiple of 128)
    batch = 8

    kx, kp, kparam = jax.random.split(key, 3)
    x = jax.random.normal(kx, (batch, n_cards), jnp.float32)                      # pool encoding
    pack = (jax.random.uniform(kp, (batch, n_cards)) < 0.1).astype(jnp.float32)   # pack mask

    real_params = init_params(kparam, n_cards)
    kernel_params = prepare_kernel_params(real_params, n_cards)

    out = draftnet_forward(x, pack, kernel_params)
    out = jax.block_until_ready(out)
    assert out.shape == (batch, n_cards)

    # Tight check vs. an identical bf16/f32-accumulate tanh-GELU numeric path.
    ref_tight = reference_kernel_path(x.astype(jnp.bfloat16), pack, kernel_params)
    assert jnp.allclose(out, ref_tight, atol=1e-3, rtol=1e-3)

    # Loose check vs. the pure-f32 original-module forward
    # (bf16 weight/input quantization + tanh-GELU approximation).
    ref_full = reference_module_f32(x, pack, real_params)
    assert jnp.allclose(out, ref_full, atol=5e-2, rtol=5e-2)

    print("KERNEL_OK")
</pallas_src>

<mosaic_0001>
module attributes {stable_mosaic.version = 11 : i64} {
  func.func @draftnet_kernel(%arg0: i32, %arg1: memref<16x256xbf16, #tpu.memory_space<vmem>>, %arg2: memref<16x256xbf16, #tpu.memory_space<vmem>>, %arg3: memref<256x512xbf16, #tpu.memory_space<vmem>>, %arg4: memref<512x384xbf16, #tpu.memory_space<vmem>>, %arg5: memref<384x256xbf16, #tpu.memory_space<vmem>>, %arg6: memref<1x1152xf32, #tpu.memory_space<vmem>>, %arg7: memref<16x256xf32, #tpu.memory_space<vmem>>) attributes {dimension_semantics = [#tpu.dimension_semantics<parallel>], iteration_bounds = array<i64: 1>, scalar_prefetch = 0 : i64, scratch_operands = 0 : i64, tpu.core_type = #tpu.core_type<tc>, window_params = [{transform_indices = @transform_0, window_bounds = array<i64: 16, 256>}, {transform_indices = @transform_1, window_bounds = array<i64: 16, 256>}, {pipeline_mode = #tpu.pipeline_mode<synchronous>, transform_indices = @transform_2, window_bounds = array<i64: 256, 512>}, {pipeline_mode = #tpu.pipeline_mode<synchronous>, transform_indices = @transform_3, window_bounds = array<i64: 512, 384>}, {pipeline_mode = #tpu.pipeline_mode<synchronous>, transform_indices = @transform_4, window_bounds = array<i64: 384, 256>}, {pipeline_mode = #tpu.pipeline_mode<synchronous>, transform_indices = @transform_5, window_bounds = array<i64: 1, 1152>}, {transform_indices = @transform_6, window_bounds = array<i64: 16, 256>}]} {
    %c0 = arith.constant 0 : index
    %c0_0 = arith.constant 0 : index
    %0 = vector.load %arg6[%c0, %c0_0] : memref<1x1152xf32, #tpu.memory_space<vmem>>, vector<1x512xf32>
    %c0_1 = arith.constant 0 : index
    %c512 = arith.constant 512 : index
    %1 = vector.load %arg6[%c0_1, %c512] : memref<1x1152xf32, #tpu.memory_space<vmem>>, vector<1x384xf32>
    %c0_2 = arith.constant 0 : index
    %c896 = arith.constant 896 : index
    %2 = vector.load %arg6[%c0_2, %c896] : memref<1x1152xf32, #tpu.memory_space<vmem>>, vector<1x256xf32>
    %c0_3 = arith.constant 0 : index
    %c0_4 = arith.constant 0 : index
    %3 = vector.load %arg1[%c0_3, %c0_4] : memref<16x256xbf16, #tpu.memory_space<vmem>>, vector<16x256xbf16>
    %c0_5 = arith.constant 0 : index
    %c0_6 = arith.constant 0 : index
    %4 = vector.load %arg3[%c0_5, %c0_6] : memref<256x512xbf16, #tpu.memory_space<vmem>>, vector<256x512xbf16>
    %cst = arith.constant dense<0.000000e+00> : vector<16x512xf32>
    %5 = tpu.matmul %3, %4, %cst {dimension_numbers = #tpu.dot_dimension_numbers<[1], [0], [0], [1], [0, 0, 1, 1], [], []>} : vector<16x256xbf16>, vector<256x512xbf16>, vector<16x512xf32> -> vector<16x512xf32>
    %6 = vector.broadcast %0 : vector<1x512xf32> to vector<16x512xf32>
    %7 = arith.addf %5, %6 : vector<16x512xf32>
    %8 = arith.mulf %7, %7 : vector<16x512xf32>
    %9 = arith.mulf %7, %8 : vector<16x512xf32>
    %cst_7 = arith.constant 4.471500e-02 : f32
    %10 = vector.broadcast %cst_7 : f32 to vector<16x512xf32>
    %11 = arith.mulf %10, %9 : vector<16x512xf32>
    %12 = arith.addf %7, %11 : vector<16x512xf32>
    %cst_8 = arith.constant 0.797884583 : f32
    %13 = vector.broadcast %cst_8 : f32 to vector<16x512xf32>
    %14 = arith.mulf %13, %12 : vector<16x512xf32>
    %15 = math.tanh %14 : vector<16x512xf32>
    %cst_9 = arith.constant 1.000000e+00 : f32
    %16 = vector.broadcast %cst_9 : f32 to vector<16x512xf32>
    %17 = arith.addf %16, %15 : vector<16x512xf32>
    %cst_10 = arith.constant 5.000000e-01 : f32
    %18 = vector.broadcast %cst_10 : f32 to vector<16x512xf32>
    %19 = arith.mulf %18, %17 : vector<16x512xf32>
    %20 = arith.mulf %7, %19 : vector<16x512xf32>
    %21 = arith.truncf %20 : vector<16x512xf32> to vector<16x512xbf16>
    %c0_11 = arith.constant 0 : index
    %c0_12 = arith.constant 0 : index
    %22 = vector.load %arg4[%c0_11, %c0_12] : memref<512x384xbf16, #tpu.memory_space<vmem>>, vector<512x384xbf16>
    %cst_13 = arith.constant dense<0.000000e+00> : vector<16x384xf32>
    %23 = tpu.matmul %21, %22, %cst_13 {dimension_numbers = #tpu.dot_dimension_numbers<[1], [0], [0], [1], [0, 0, 1, 1], [], []>} : vector<16x512xbf16>, vector<512x384xbf16>, vector<16x384xf32> -> vector<16x384xf32>
    %24 = vector.broadcast %1 : vector<1x384xf32> to vector<16x384xf32>
    %25 = arith.addf %23, %24 : vector<16x384xf32>
    %26 = arith.mulf %25, %25 : vector<16x384xf32>
    %27 = arith.mulf %25, %26 : vector<16x384xf32>
    %cst_14 = arith.constant 4.471500e-02 : f32
    %28 = vector.broadcast %cst_14 : f32 to vector<16x384xf32>
    %29 = arith.mulf %28, %27 : vector<16x384xf32>
    %30 = arith.addf %25, %29 : vector<16x384xf32>
    %cst_15 = arith.constant 0.797884583 : f32
    %31 = vector.broadcast %cst_15 : f32 to vector<16x384xf32>
    %32 = arith.mulf %31, %30 : vector<16x384xf32>
    %33 = math.tanh %32 : vector<16x384xf32>
    %cst_16 = arith.constant 1.000000e+00 : f32
    %34 = vector.broadcast %cst_16 : f32 to vector<16x384xf32>
    %35 = arith.addf %34, %33 : vector<16x384xf32>
    %cst_17 = arith.constant 5.000000e-01 : f32
    %36 = vector.broadcast %cst_17 : f32 to vector<16x384xf32>
    %37 = arith.mulf %36, %35 : vector<16x384xf32>
    %38 = arith.mulf %25, %37 : vector<16x384xf32>
    %39 = arith.truncf %38 : vector<16x384xf32> to vector<16x384xbf16>
    %c0_18 = arith.constant 0 : index
    %c0_19 = arith.constant 0 : index
    %40 = vector.load %arg5[%c0_18, %c0_19] : memref<384x256xbf16, #tpu.memory_space<vmem>>, vector<384x256xbf16>
    %cst_20 = arith.constant dense<0.000000e+00> : vector<16x256xf32>
    %41 = tpu.matmul %39, %40, %cst_20 {dimension_numbers = #tpu.dot_dimension_numbers<[1], [0], [0], [1], [0, 0, 1, 1], [], []>} : vector<16x384xbf16>, vector<384x256xbf16>, vector<16x256xf32> -> vector<16x256xf32>
    %42 = vector.broadcast %2 : vector<1x256xf32> to vector<16x256xf32>
    %43 = arith.addf %41, %42 : vector<16x256xf32>
    %c0_21 = arith.constant 0 : index
    %c0_22 = arith.constant 0 : index
    %44 = vector.load %arg2[%c0_21, %c0_22] : memref<16x256xbf16, #tpu.memory_space<vmem>>, vector<16x256xbf16>
    %45 = arith.extf %44 : vector<16x256xbf16> to vector<16x256xf32>
    %46 = arith.mulf %43, %45 : vector<16x256xf32>
    %c0_23 = arith.constant 0 : index
    %c0_24 = arith.constant 0 : index
    %47 = vector.load %arg7[%c0_23, %c0_24] : memref<16x256xf32, #tpu.memory_space<vmem>>, vector<16x256xf32>
    tpu.vector_store %arg7[%c0_23, %c0_24], %46 {strides = array<i32>} : memref<16x256xf32, #tpu.memory_space<vmem>>, vector<16x256xf32>,
    return
  }
  func.func @transform_0(%arg0: i32) -> (i32, i32) {
    %c0_i32 = arith.constant 0 : i32
    %c0_i32_0 = arith.constant 0 : i32
    return %arg0, %c0_i32 : i32, i32
  }
  func.func @transform_1(%arg0: i32) -> (i32, i32) {
    %c0_i32 = arith.constant 0 : i32
    %c0_i32_0 = arith.constant 0 : i32
    return %arg0, %c0_i32 : i32, i32
  }
  func.func @transform_2(%arg0: i32) -> (i32, i32) {
    %c0_i32 = arith.constant 0 : i32
    %c0_i32_0 = arith.constant 0 : i32
    %c0_i32_1 = arith.constant 0 : i32
    return %c0_i32, %c0_i32_0 : i32, i32
  }
  func.func @transform_3(%arg0: i32) -> (i32, i32) {
    %c0_i32 = arith.constant 0 : i32
    %c0_i32_0 = arith.constant 0 : i32
    %c0_i32_1 = arith.constant 0 : i32
    return %c0_i32, %c0_i32_0 : i32, i32
  }
  func.func @transform_4(%arg0: i32) -> (i32, i32) {
    %c0_i32 = arith.constant 0 : i32
    %c0_i32_0 = arith.constant 0 : i32
    %c0_i32_1 = arith.constant 0 : i32
    return %c0_i32, %c0_i32_0 : i32, i32
  }
  func.func @transform_5(%arg0: i32) -> (i32, i32) {
    %c0_i32 = arith.constant 0 : i32
    %c0_i32_0 = arith.constant 0 : i32
    %c0_i32_1 = arith.constant 0 : i32
    return %c0_i32, %c0_i32_0 : i32, i32
  }
  func.func @transform_6(%arg0: i32) -> (i32, i32) {
    %c0_i32 = arith.constant 0 : i32
    %c0_i32_0 = arith.constant 0 : i32
    return %arg0, %c0_i32 : i32, i32
  }
}

</mosaic_0001>

<bundles_post_ra>
// kernel: tpu_custom_call.1
= control target key start
LH: loop header
LB: loop body
LE: loop exit
PB: predicated region body
PF: predicated region fallthrough
CT: control target
= control target key end

     0   :  { %11 = vsyncpa [#allocation3], 0  ;;  %s2877_s0 = inlined_call_operand.hbm [shape: bf16[16,256], index: 0, kind: input, shape index: {}]   ;;  %s2878_s1 = inlined_call_operand.hbm [shape: bf16[16,256], index: 1, kind: input, shape index: {}]   ;;  %s2879_s2 = inlined_call_operand.hbm [shape: bf16[256,512], index: 2, kind: input, shape index: {}]   ;;  %s2880_s3 = inlined_call_operand.hbm [shape: bf16[512,384], index: 3, kind: input, shape index: {}]   ;;  %s2881_s4 = inlined_call_operand.hbm [shape: bf16[384,256], index: 4, kind: input, shape index: {}]   ;;  %s2882_s5 = inlined_call_operand.vmem [shape: f32[1,1152], index: 5, kind: input, shape index: {}]   ;;  %s2883_s6 = inlined_call_operand.hbm [shape: f32[16,256], index: 6, kind: output, shape index: {}]  }
   0x1   :  { %12 = vsyncpa [#allocation6], 0 }
   0x2   :  { %13 = vsyncpa [#allocation9], 0 }
   0x3   :  { %14 = vsyncpa [#allocation4], 0  ;;  %s2696_s21 = smov [#allocation5]   ;;  %s2697_s23 = smov [#allocation8]  }
   0x4   :  { %s32_s22 = sshll.u32 %s2696_s21, 4  ;;  %s56_s24 = sshll.u32 %s2697_s23, 4  ;;  %s33_s22 = int_to_ptr.vmem [resolvable:$true] %s32_s22  ;;  %s57_s24 = int_to_ptr.vmem [resolvable:$true] %s56_s24 }
   0x5   :  { %s2576_s25 = scalar_lea.vmem %s33_s22, 256  ;;  %p2581_p1 = scmp.lt.s32.totalorder %s33_s22, %s33_s22 }
   0x6   :  { %p2577_p0 = scmp.ne.s32.totalorder %s33_s22, %s2576_s25  ;;  %p2582_p2 = scmp.lt.s32.totalorder %s2576_s25, %s2576_s25 }
   0x8   :  { %p2583_p3 = por %p2582_p2, %p2581_p1 }
   0xa   :  { %p2584_p4 = pnand %p2583_p3, %p2577_p0 }
   0xc   :  { %2587 = shalt.err (!%p2584_p4)
}
   0xd   :  { %s2698_s26 = smov 128   ;;  %s2699_s27 = smov 8  }
   0xe   :  { %38 = dma.hbm_to_vmem [thread:$0]  %s2878_s1, 256, %s33_s22, [#allocation6], %s2698_s26, %s2698_s26, %s2699_s27  }
   0xf   :  { %s2596_s30 = scalar_lea.vmem %s57_s24, 12288  ;;  %p2601_p6 = scmp.lt.s32.totalorder %s57_s24, %s57_s24 }
  0x10   :  { %p2597_p5 = scmp.ne.s32.totalorder %s57_s24, %s2596_s30  ;;  %p2602_p7 = scmp.lt.s32.totalorder %s2596_s30, %s2596_s30 }
  0x12   :  { %p2603_p8 = por %p2602_p7, %p2601_p6 }
  0x14   :  { %p2604_p9 = pnand %p2603_p8, %p2597_p5 }
  0x16   :  { %2607 = shalt.err (!%p2604_p9)
}
  0x17   :  { %s2700_s7 = smov 192   ;;  %s2701_s8 = smov 12  }
  0x18   :  { %62 = dma.hbm_to_vmem [thread:$0]  %s2880_s3, 12288, %s57_s24, [#allocation9], %s2700_s7, %s2700_s7, %s2701_s8  }
  0x19   :  { %s2702_s11 = smov [#allocation2]   ;;  %s2703_s13 = smov [#allocation7]  }
  0x1a   :  { %s20_s12 = sshll.u32 %s2702_s11, 4  ;;  %s44_s14 = sshll.u32 %s2703_s13, 4  ;;  %s21_s12 = int_to_ptr.vmem [resolvable:$true] %s20_s12  ;;  %s45_s14 = int_to_ptr.vmem [resolvable:$true] %s44_s14 }
  0x1b   :  { %s2616_s1 = scalar_lea.vmem %s21_s12, 256  ;;  %p2621_p11 = scmp.lt.s32.totalorder %s21_s12, %s21_s12 }
  0x1c   :  { %p2617_p10 = scmp.ne.s32.totalorder %s21_s12, %s2616_s1  ;;  %p2622_p12 = scmp.lt.s32.totalorder %s2616_s1, %s2616_s1 }
  0x1e   :  { %p2623_p13 = por %p2622_p12, %p2621_p11 }
  0x20   :  { %p2624_p0 = pnand %p2623_p13, %p2617_p10 }
  0x22   :  { %2627 = shalt.err (!%p2624_p0)
}
  0x23   :  { %26 = dma.hbm_to_vmem [thread:$0]  %s2877_s0, 256, %s21_s12, [#allocation3], %s2698_s26, %s2698_s26, %s2699_s27  }
  0x24   :  { %s2636_s3 = scalar_lea.vmem %s45_s14, 8192  ;;  %p2641_p2 = scmp.lt.s32.totalorder %s45_s14, %s45_s14 }
  0x25   :  { %p2637_p1 = scmp.ne.s32.totalorder %s45_s14, %s2636_s3  ;;  %p2642_p3 = scmp.lt.s32.totalorder %s2636_s3, %s2636_s3 }
  0x27   :  { %p2643_p4 = por %p2642_p3, %p2641_p2 }
  0x29   :  { %p2644_p5 = pnand %p2643_p4, %p2637_p1 }
  0x2b   :  { %2647 = shalt.err (!%p2644_p5)
}
  0x2c   :  { %s2704_s17 = smov 256   ;;  %s2705_s18 = smov 16  }
  0x2d   :  { %50 = dma.hbm_to_vmem [thread:$0]  %s2879_s2, 8192, %s45_s14, [#allocation6], %s2704_s17, %s2704_s17, %s2705_s18  }
  0x2e   :  { %s2706_s21 = smov [#allocation10]  }
  0x2f   :  { %s68_s22 = sshll.u32 %s2706_s21, 4  ;;  %s69_s22 = int_to_ptr.vmem [resolvable:$true] %s68_s22 }
  0x30   :  { %s2656_s0 = scalar_lea.vmem %s69_s22, 6144  ;;  %p2661_p7 = scmp.lt.s32.totalorder %s69_s22, %s69_s22 }
  0x31   :  { %p2657_p6 = scmp.ne.s32.totalorder %s69_s22, %s2656_s0  ;;  %p2662_p8 = scmp.lt.s32.totalorder %s2656_s0, %s2656_s0 }
  0x33   :  { %p2663_p9 = por %p2662_p8, %p2661_p7 }
  0x35   :  { %p2664_p10 = pnand %p2663_p9, %p2657_p6 }
  0x37   :  { %2667 = shalt.err (!%p2664_p10)
}
  0x38   :  { %74 = dma.hbm_to_vmem [thread:$0]  %s2881_s4, 6144, %s69_s22, [#allocation9], %s2698_s26, %s2698_s26, %s2699_s27  }
  0x39   :  { %2688 = dma.done.wait [#allocation3], 256  }
  0x3a   :  { %2689 = vsyncadd [#allocation3], 4294967040 }
  0x3b   :  { %2690 = dma.done.wait [#allocation6], 8448  }
  0x3c   :  { %2691 = vsyncadd [#allocation6], 4294958848 }
  0x3d   :  { %2692 = dma.done.wait [#allocation9], 18432  }
  0x3e   :  { %2693 = vsyncadd [#allocation9], 4294948864  ;;  %v2241_v0 = vld [vmem:[#allocation7 + $0xe4] ss:$16 sps:$4 sm:$0xff]   ;;  %v2243_v1 = vld [vmem:[#allocation7 + $0xec] ss:$16 sps:$4 sm:$0xff]  }
  0x3f   :  { %513 = vmatprep.subr.bf16.mxu0 %v2241_v0  ;;  %v2245_v2 = vld [vmem:[#allocation7 + $0xe0] ss:$16 sps:$4 sm:$0xff]   ;;  %v2246_v3 = vld [vmem:[#allocation7 + $0xe8] ss:$16 sps:$4 sm:$0xff]   ;;  %556 = vmatprep.subr.bf16.mxu1 %v2243_v1  ;;  %v2247_v4 = vld [vmem:[#allocation7 + $0xc4] ss:$16 sps:$4 sm:$0xff]  }
  0x40   :  { %514 = vmatpush1.bf16.msra.mxu0 %v2245_v2  ;;  %557 = vmatpush1.bf16.msra.mxu1 %v2246_v3  ;;  %v2249_v5 = vld [vmem:[#allocation7 + $0xcc] ss:$16 sps:$4 sm:$0xff]   ;;  %v2251_v6 = vld [vmem:[#allocation7 + $0xc0] ss:$16 sps:$4 sm:$0xff]   ;;  %v2252_v7 = vld [vmem:[#allocation7 + $0xc8] ss:$16 sps:$4 sm:$0xff]  }
  0x41   :  { %515 = vmatprep.subr.bf16.mxu0 %v2247_v4  ;;  %558 = vmatprep.subr.bf16.mxu1 %v2249_v5  ;;  %v2253_v8 = vld [vmem:[#allocation7 + $0xa4] ss:$16 sps:$4 sm:$0xff]   ;;  %v2255_v9 = vld [vmem:[#allocation7 + $0xac] ss:$16 sps:$4 sm:$0xff]   ;;  %v2257_v10 = vld [vmem:[#allocation7 + $0xa0] ss:$16 sps:$4 sm:$0xff]  }
  0x42   :  { %v2258_v11 = vld [vmem:[#allocation7 + $0xa8] ss:$16 sps:$4 sm:$0xff]   ;;  %v2259_v12 = vld [vmem:[#allocation7 + $0x84] ss:$16 sps:$4 sm:$0xff]   ;;  %v2261_v13 = vld [vmem:[#allocation7 + $0x8c] ss:$16 sps:$4 sm:$0xff]  }
  0x43   :  { %v2263_v14 = vld [vmem:[#allocation7 + $0x80] ss:$16 sps:$4 sm:$0xff]   ;;  %v2264_v15 = vld [vmem:[#allocation7 + $0x88] ss:$16 sps:$4 sm:$0xff]   ;;  %v2265_v16 = vld [vmem:[#allocation7 + $0x64] ss:$16 sps:$4 sm:$0xff]  }
  0x44   :  { %516 = vmatpush1.bf16.msra.mxu0 %v2251_v6  ;;  %559 = vmatpush1.bf16.msra.mxu1 %v2252_v7  ;;  %v2267_v17 = vld [vmem:[#allocation7 + $0x6c] ss:$16 sps:$4 sm:$0xff]   ;;  %v2269_v18 = vld [vmem:[#allocation7 + $0x60] ss:$16 sps:$4 sm:$0xff]   ;;  %v2270_v19 = vld [vmem:[#allocation7 + $0x68] ss:$16 sps:$4 sm:$0xff]  }
  0x45   :  { %517 = vmatprep.subr.bf16.mxu0 %v2253_v8  ;;  %560 = vmatprep.subr.bf16.mxu1 %v2255_v9  ;;  %v2271_v20 = vld [vmem:[#allocation7 + $0x44] ss:$16 sps:$4 sm:$0xff]   ;;  %v2273_v21 = vld [vmem:[#allocation7 + $0x4c] ss:$16 sps:$4 sm:$0xff]   ;;  %v2275_v22 = vld [vmem:[#allocation7 + $0x40] ss:$16 sps:$4 sm:$0xff]  }
  0x46   :  { %v2276_v23 = vld [vmem:[#allocation7 + $0x48] ss:$16 sps:$4 sm:$0xff]   ;;  %v2277_v24 = vld [vmem:[#allocation7 + $0x24] ss:$16 sps:$4 sm:$0xff]   ;;  %v2279_v25 = vld [vmem:[#allocation7 + $0x2c] ss:$16 sps:$4 sm:$0xff]  }
  0x47   :  { %v2281_v26 = vld [vmem:[#allocation7 + $0x20] ss:$16 sps:$4 sm:$0xff]   ;;  %v2282_v27 = vld [vmem:[#allocation7 + $0x28] ss:$16 sps:$4 sm:$0xff]   ;;  %v2283_v28 = vld [vmem:[#allocation7 + $0x4] ss:$16 sps:$4 sm:$0xff]  }
  0x48   :  { %518 = vmatpush1.bf16.msra.mxu0 %v2257_v10  ;;  %561 = vmatpush1.bf16.msra.mxu1 %v2258_v11  ;;  %v2285_v29 = vld [vmem:[#allocation7 + $0xc] ss:$16 sps:$4 sm:$0xff]   ;;  %v2287_v30 = vld [vmem:[#allocation7] ss:$16 sps:$4 sm:$0xff]   ;;  %v2288_v31 = vld [vmem:[#allocation7 + $0x8] ss:$16 sps:$4 sm:$0xff]  }
  0x49   :  { %519 = vmatprep.subr.bf16.mxu0 %v2259_v12  ;;  %562 = vmatprep.subr.bf16.mxu1 %v2261_v13  ;;  %v2289_v32 = vld [vmem:[#allocation7 + $0x1e4] ss:$16 sps:$4 sm:$0xff]   ;;  %v2291_v33 = vld [vmem:[#allocation7 + $0x1ec] ss:$16 sps:$4 sm:$0xff]   ;;  %v2293_v34 = vld [vmem:[#allocation7 + $0x1e0] ss:$16 sps:$4 sm:$0xff]  }
  0x4a   :  { %v2294_v35 = vld [vmem:[#allocation7 + $0x1e8] ss:$16 sps:$4 sm:$0xff]   ;;  %v2295_v36 = vld [vmem:[#allocation7 + $0x1c4] ss:$16 sps:$4 sm:$0xff]   ;;  %v2297_v37 = vld [vmem:[#allocation7 + $0x1cc] ss:$16 sps:$4 sm:$0xff]  }
  0x4b   :  { %v2299_v38 = vld [vmem:[#allocation7 + $0x1c0] ss:$16 sps:$4 sm:$0xff]   ;;  %v2300_v39 = vld [vmem:[#allocation7 + $0x1c8] ss:$16 sps:$4 sm:$0xff]   ;;  %v2301_v40 = vld [vmem:[#allocation7 + $0x1a4] ss:$16 sps:$4 sm:$0xff]  }
  0x4c   :  { %520 = vmatpush1.bf16.msra.mxu0 %v2263_v14  ;;  %563 = vmatpush1.bf16.msra.mxu1 %v2264_v15  ;;  %v2303_v41 = vld [vmem:[#allocation7 + $0x1ac] ss:$16 sps:$4 sm:$0xff]   ;;  %v2305_v42 = vld [vmem:[#allocation7 + $0x1a0] ss:$16 sps:$4 sm:$0xff]   ;;  %v2306_v43 = vld [vmem:[#allocation7 + $0x1a8] ss:$16 sps:$4 sm:$0xff]  }
  0x4d   :  { %521 = vmatprep.subr.bf16.mxu0 %v2265_v16  ;;  %564 = vmatprep.subr.bf16.mxu1 %v2267_v17  ;;  %v2307_v44 = vld [vmem:[#allocation7 + $0x184] ss:$16 sps:$4 sm:$0xff]   ;;  %v2309_v45 = vld [vmem:[#allocation7 + $0x18c] ss:$16 sps:$4 sm:$0xff]   ;;  %v2311_v46 = vld [vmem:[#allocation7 + $0x180] ss:$16 sps:$4 sm:$0xff]  }
  0x4e   :  { %v2312_v47 = vld [vmem:[#allocation7 + $0x188] ss:$16 sps:$4 sm:$0xff]   ;;  %v2339_v48 = vld [vmem:[#allocation2 + $0x4] ss:$8 sps:$4 sm:$0xff]   ;;  %v2317_v51 = vld [vmem:[#allocation7 + $0x160] ss:$16 sps:$4 sm:$0xff]  }
  0x4f   :  { %v2313_v49 = vld [vmem:[#allocation7 + $0x164] ss:$16 sps:$4 sm:$0xff]   ;;  %v2315_v50 = vld [vmem:[#allocation7 + $0x16c] ss:$16 sps:$4 sm:$0xff]   ;;  %545 = vmatprep.mubr.bf16.mxu0 %v2339_v48  ;;  %588 = vmatprep.mubr.bf16.mxu1 %v2339_v48  ;;  %v2318_v52 = vld [vmem:[#allocation7 + $0x168] ss:$16 sps:$4 sm:$0xff]  }
  0x50   :  { %522 = vmatpush1.bf16.msra.mxu0 %v2269_v18  ;;  %565 = vmatpush1.bf16.msra.mxu1 %v2270_v19  ;;  %v2319_v53 = vld [vmem:[#allocation7 + $0x144] ss:$16 sps:$4 sm:$0xff]   ;;  %v2321_v54 = vld [vmem:[#allocation7 + $0x14c] ss:$16 sps:$4 sm:$0xff]   ;;  %v2323_v55 = vld [vmem:[#allocation7 + $0x140] ss:$16 sps:$4 sm:$0xff]  }
  0x51   :  { %523 = vmatprep.subr.bf16.mxu0 %v2271_v20  ;;  %566 = vmatprep.subr.bf16.mxu1 %v2273_v21  ;;  %v2324_v56 = vld [vmem:[#allocation7 + $0x148] ss:$16 sps:$4 sm:$0xff]   ;;  %v2325_v57 = vld [vmem:[#allocation7 + $0x124] ss:$16 sps:$4 sm:$0xff]   ;;  %v2327_v58 = vld [vmem:[#allocation7 + $0x12c] ss:$16 sps:$4 sm:$0xff]  }
  0x52   :  { %v2329_v59 = vld [vmem:[#allocation7 + $0x120] ss:$16 sps:$4 sm:$0xff]   ;;  %v2330_v60 = vld [vmem:[#allocation7 + $0x128] ss:$16 sps:$4 sm:$0xff]   ;;  %v2331_v61 = vld [vmem:[#allocation7 + $0x104] ss:$16 sps:$4 sm:$0xff]  }
  0x53   :  { %v2333_v62 = vld [vmem:[#allocation7 + $0x10c] ss:$16 sps:$4 sm:$0xff]   ;;  %v2335_v63 = vld [vmem:[#allocation7 + $0x100] ss:$16 sps:$4 sm:$0xff]   ;;  %v2336_v0 = vld [vmem:[#allocation7 + $0x108] ss:$16 sps:$4 sm:$0xff]  }
  0x54   :  { %524 = vmatpush1.bf16.msra.mxu0 %v2275_v22  ;;  %567 = vmatpush1.bf16.msra.mxu1 %v2276_v23  ;;  %v2342_v1 = vld [vmem:[#allocation8 + $0xac] ss:$12 sps:$4 sm:$0xff]   ;;  %v2337_v3 = vld [vmem:[#allocation2] ss:$8 sps:$4 sm:$0xff]   ;;  %v2346_v8 = vld [vmem:[#allocation8 + $0x90] ss:$12 sps:$4 sm:$0xff]  }
  0x55   :  { %525 = vmatprep.subr.bf16.mxu0 %v2277_v24  ;;  %568 = vmatprep.subr.bf16.mxu1 %v2279_v25  ;;  %v2345_v2 = vld [vmem:[#allocation8 + $0x22c] ss:$12 sps:$4 sm:$0xff]   ;;  %v2340_v4 = vld [vmem:[#allocation8 + $0xa8] ss:$12 sps:$4 sm:$0xff]   ;;  %v2349_v9 = vld [vmem:[#allocation8 + $0x210] ss:$12 sps:$4 sm:$0xff]  }
  0x56   :  { %v2343_v5 = vld [vmem:[#allocation8 + $0x228] ss:$12 sps:$4 sm:$0xff]   ;;  %v2352_v12 = vld [vmem:[#allocation8 + $0x78] ss:$12 sps:$4 sm:$0xff]   ;;  %v2358_v16 = vld [vmem:[#allocation8 + $0x60] ss:$12 sps:$4 sm:$0xff]  }
  0x57   :  { %v2348_v6 = vld [vmem:[#allocation8 + $0x94] ss:$12 sps:$4 sm:$0xff]   ;;  %v2354_v10 = vld [vmem:[#allocation8 + $0x7c] ss:$12 sps:$4 sm:$0xff]   ;;  %v2355_v13 = vld [vmem:[#allocation8 + $0x1f8] ss:$12 sps:$4 sm:$0xff]  }
  0x58   :  { %526 = vmatpush1.bf16.msra.mxu0 %v2281_v26  ;;  %569 = vmatpush1.bf16.msra.mxu1 %v2282_v27  ;;  %v2351_v7 = vld [vmem:[#allocation8 + $0x214] ss:$12 sps:$4 sm:$0xff]   ;;  %v2357_v11 = vld [vmem:[#allocation8 + $0x1fc] ss:$12 sps:$4 sm:$0xff]   ;;  %v2360_v14 = vld [vmem:[#allocation8 + $0x64] ss:$12 sps:$4 sm:$0xff]  }
  0x59   :  { %527 = vmatprep.subr.bf16.mxu0 %v2283_v28  ;;  %570 = vmatprep.subr.bf16.mxu1 %v2285_v29  ;;  %v2363_v15 = vld [vmem:[#allocation8 + $0x1e4] ss:$12 sps:$4 sm:$0xff]   ;;  %v2361_v17 = vld [vmem:[#allocation8 + $0x1e0] ss:$12 sps:$4 sm:$0xff]   ;;  %v2364_v20 = vld [vmem:[#allocation8 + $0x48] ss:$12 sps:$4 sm:$0xff]  }
  0x5a   :  { %v2366_v18 = vld [vmem:[#allocation8 + $0x4c] ss:$12 sps:$4 sm:$0xff]   ;;  %v2367_v21 = vld [vmem:[#allocation8 + $0x1c8] ss:$12 sps:$4 sm:$0xff]   ;;  %v2370_v24 = vld [vmem:[#allocation8 + $0x30] ss:$12 sps:$4 sm:$0xff]  }
  0x5b   :  { %v2369_v19 = vld [vmem:[#allocation8 + $0x1cc] ss:$12 sps:$4 sm:$0xff]   ;;  %v2372_v22 = vld [vmem:[#allocation8 + $0x34] ss:$12 sps:$4 sm:$0xff]   ;;  %v2373_v25 = vld [vmem:[#allocation8 + $0x1b0] ss:$12 sps:$4 sm:$0xff]  }
  0x5c   :  { %528 = vmatpush1.bf16.msra.mxu0 %v2287_v30  ;;  %571 = vmatpush1.bf16.msra.mxu1 %v2288_v31  ;;  %v2375_v23 = vld [vmem:[#allocation8 + $0x1b4] ss:$12 sps:$4 sm:$0xff]   ;;  %v2378_v26 = vld [vmem:[#allocation8 + $0x1c] ss:$12 sps:$4 sm:$0xff]   ;;  %v2376_v28 = vld [vmem:[#allocation8 + $0x18] ss:$12 sps:$4 sm:$0xff]  }
  0x5d   :  { %529 = vmatprep.subr.bf16.mxu0 %v2289_v32  ;;  %572 = vmatprep.subr.bf16.mxu1 %v2291_v33  ;;  %v2381_v27 = vld [vmem:[#allocation8 + $0x19c] ss:$12 sps:$4 sm:$0xff]   ;;  %v2379_v29 = vld [vmem:[#allocation8 + $0x198] ss:$12 sps:$4 sm:$0xff]   ;;  %v2382_v32 = vld [vmem:[#allocation8] ss:$12 sps:$4 sm:$0xff]  }
  0x5e   :  { %v2384_v30 = vld [vmem:[#allocation8 + $0x4] ss:$12 sps:$4 sm:$0xff]   ;;  %v2385_v33 = vld [vmem:[#allocation8 + $0x180] ss:$12 sps:$4 sm:$0xff]  }
  0x5f   :  { %v2387_v31 = vld [vmem:[#allocation8 + $0x184] ss:$12 sps:$4 sm:$0xff]   ;;  %v2406_v48 = vld [vmem:[#allocation8 + $0x120] ss:$12 sps:$4 sm:$0xff]  }
  0x60   :  { %530 = vmatpush2.bf16.msra.mxu0 %v2293_v34  ;;  %573 = vmatpush2.bf16.msra.mxu1 %v2294_v35  ;;  %v2390_v34 = vld [vmem:[#allocation8 + $0x16c] ss:$12 sps:$4 sm:$0xff]  }
  0x61   :  { %531 = vmatprep.subr.bf16.mxu0 %v2295_v36  ;;  %574 = vmatprep.subr.bf16.mxu1 %v2297_v37  ;;  %v2393_v35 = vld [vmem:[#allocation8 + $0x2ec] ss:$12 sps:$4 sm:$0xff]   ;;  %v2388_v36 = vld [vmem:[#allocation8 + $0x168] ss:$12 sps:$4 sm:$0xff]  }
  0x62   :  { %v2391_v37 = vld [vmem:[#allocation8 + $0x2e8] ss:$12 sps:$4 sm:$0xff]  }
  0x64   :  { %532 = vmatpush2.bf16.msra.mxu0 %v2299_v38  ;;  %575 = vmatpush2.bf16.msra.mxu1 %v2300_v39  ;;  %v2396_v38 = vld [vmem:[#allocation8 + $0x154] ss:$12 sps:$4 sm:$0xff]  }
  0x65   :  { %533 = vmatprep.subr.bf16.mxu0 %v2301_v40  ;;  %576 = vmatprep.subr.bf16.mxu1 %v2303_v41  ;;  %v2399_v39 = vld [vmem:[#allocation8 + $0x2d4] ss:$12 sps:$4 sm:$0xff]   ;;  %v2394_v40 = vld [vmem:[#allocation8 + $0x150] ss:$12 sps:$4 sm:$0xff]  }
  0x66   :  { %v2397_v41 = vld [vmem:[#allocation8 + $0x2d0] ss:$12 sps:$4 sm:$0xff]  }
  0x68   :  { %534 = vmatpush2.bf16.msra.mxu0 %v2305_v42  ;;  %577 = vmatpush2.bf16.msra.mxu1 %v2306_v43  ;;  %v2402_v42 = vld [vmem:[#allocation8 + $0x13c] ss:$12 sps:$4 sm:$0xff]  }
  0x69   :  { %535 = vmatprep.subr.bf16.mxu0 %v2307_v44  ;;  %578 = vmatprep.subr.bf16.mxu1 %v2309_v45  ;;  %v2405_v43 = vld [vmem:[#allocation8 + $0x2bc] ss:$12 sps:$4 sm:$0xff]   ;;  %v2400_v44 = vld [vmem:[#allocation8 + $0x138] ss:$12 sps:$4 sm:$0xff]  }
  0x6a   :  { %v2403_v45 = vld [vmem:[#allocation8 + $0x2b8] ss:$12 sps:$4 sm:$0xff]  }
  0x6c   :  { %536 = vmatpush2.bf16.msra.mxu0 %v2311_v46  ;;  %579 = vmatpush2.bf16.msra.mxu1 %v2312_v47  ;;  %v2408_v46 = vld [vmem:[#allocation8 + $0x124] ss:$12 sps:$4 sm:$0xff]  }
  0x6d   :  { %537 = vmatprep.subr.bf16.mxu0 %v2313_v49  ;;  %580 = vmatprep.subr.bf16.mxu1 %v2315_v50  ;;  %v2411_v47 = vld [vmem:[#allocation8 + $0x2a4] ss:$12 sps:$4 sm:$0xff]   ;;  %v2409_v49 = vld [vmem:[#allocation8 + $0x2a0] ss:$12 sps:$4 sm:$0xff]  }
  0x6e   :  { %v2414_v50 = vld [vmem:[#allocation8 + $0x10c] ss:$12 sps:$4 sm:$0xff]  }
  0x70   :  { %538 = vmatpush2.bf16.msra.mxu0 %v2317_v51  ;;  %581 = vmatpush2.bf16.msra.mxu1 %v2318_v52  ;;  %v2417_v51 = vld [vmem:[#allocation8 + $0x28c] ss:$12 sps:$4 sm:$0xff]   ;;  %v2412_v52 = vld [vmem:[#allocation8 + $0x108] ss:$12 sps:$4 sm:$0xff]  }
  0x71   :  { %539 = vmatprep.subr.bf16.mxu0 %v2319_v53  ;;  %582 = vmatprep.subr.bf16.mxu1 %v2321_v54  ;;  %v2415_v53 = vld [vmem:[#allocation8 + $0x288] ss:$12 sps:$4 sm:$0xff]  }
  0x72   :  { %v2420_v54 = vld [vmem:[#allocation8 + $0xf4] ss:$12 sps:$4 sm:$0xff]  }
  0x74   :  { %540 = vmatpush2.bf16.msra.mxu0 %v2323_v55  ;;  %583 = vmatpush2.bf16.msra.mxu1 %v2324_v56  ;;  %v2423_v55 = vld [vmem:[#allocation8 + $0x274] ss:$12 sps:$4 sm:$0xff]   ;;  %v2418_v56 = vld [vmem:[#allocation8 + $0xf0] ss:$12 sps:$4 sm:$0xff]  }
  0x75   :  { %541 = vmatprep.subr.bf16.mxu0 %v2325_v57  ;;  %584 = vmatprep.subr.bf16.mxu1 %v2327_v58  ;;  %v2421_v57 = vld [vmem:[#allocation8 + $0x270] ss:$12 sps:$4 sm:$0xff]  }
  0x76   :  { %v2426_v58 = vld [vmem:[#allocation8 + $0xdc] ss:$12 sps:$4 sm:$0xff]  }
  0x78   :  { %542 = vmatpush2.bf16.msra.mxu0 %v2329_v59  ;;  %585 = vmatpush2.bf16.msra.mxu1 %v2330_v60  ;;  %v2429_v59 = vld [vmem:[#allocation8 + $0x25c] ss:$12 sps:$4 sm:$0xff]   ;;  %v2424_v60 = vld [vmem:[#allocation8 + $0xd8] ss:$12 sps:$4 sm:$0xff]  }
  0x79   :  { %543 = vmatprep.subr.bf16.mxu0 %v2331_v61  ;;  %586 = vmatprep.subr.bf16.mxu1 %v2333_v62  ;;  %v2427_v61 = vld [vmem:[#allocation8 + $0x258] ss:$12 sps:$4 sm:$0xff]   ;;  %v2430_v62 = vld [vmem:[#allocation8 + $0xc0] ss:$12 sps:$4 sm:$0xff]  }
  0x7c   :  { %544 = vmatpush2.bf16.msra.mxu0 %v2335_v63  ;;  %587 = vmatpush2.bf16.msra.mxu1 %v2336_v0  ;;  %v2432_v63 = vld [vmem:[#allocation8 + $0xc4] ss:$12 sps:$4 sm:$0xff]   ;;  %v2433_v0 = vld [vmem:[#allocation8 + $0x240] ss:$12 sps:$4 sm:$0xff]  }
  0x7d   :  { %1331 = vmatprep.subr.bf16.mxu0 %v2342_v1  ;;  %1374 = vmatprep.subr.bf16.mxu1 %v2345_v2  ;;  %v2435_v1 = vld [vmem:[#allocation8 + $0x244] ss:$12 sps:$4 sm:$0xff]  }
  0x7e   :  { %v2436_v2 = vld [vmem:[#allocation8 + $0x170] ss:$12 sps:$4 sm:$0xff]  }
  0x7f   :  { %546 = vmatmul.mubr.bf16.vlgmr.msra.gmra.mxu0 %v2337_v3  ;;  %589 = vmatmul.mubr.bf16.vlgmr.msra.gmra.mxu1 %v2337_v3  ;;  %v2437_v3 = vld [vmem:[#allocation8 + $0x2f0] ss:$12 sps:$4 sm:$0xff]  }
  0x80   :  { %1332 = vmatpush1.bf16.msra.mxu0 %v2340_v4  ;;  %1375 = vmatpush1.bf16.msra.mxu1 %v2343_v5  ;;  %v163_v4 = vlaneseq }
  0x81   :  { %1333 = vmatprep.subr.bf16.mxu0 %v2348_v6  ;;  %1376 = vmatprep.subr.bf16.mxu1 %v2351_v7 }
  0x82   :  { %v2771_v5 = vshrl.u32 %v163_v4, 7 }
  0x84   :  { %1334 = vmatpush1.bf16.msra.mxu0 %v2346_v8  ;;  %1377 = vmatpush1.bf16.msra.mxu1 %v2349_v9  ;;  %v2774_v6 = vsub.s32 0, %v2771_v5  ;;  %v173_v7 = vsub.s32 2, %v2771_v5  ;;  %v93_v8 = vld [vmem:[%s2882_s5] sm:$0xf]  ;;  %v2781_v9 = vsub.s32 1, %v2771_v5 }
  0x85   :  { %1335 = vmatprep.subr.bf16.mxu0 %v2354_v10  ;;  %1378 = vmatprep.subr.bf16.mxu1 %v2357_v11  ;;  %v177_v10 = vsub.s32 3, %v2771_v5 }
  0x86   :  { %v166_v11 = vrot.slane %v93_v8, %v2774_v6 }
  0x88   :  { %1336 = vmatpush1.bf16.msra.mxu0 %v2352_v12  ;;  %1379 = vmatpush1.bf16.msra.mxu1 %v2355_v13  ;;  %v174_v12 = vrot.slane %v93_v8, %v173_v7  ;;  %v170_v13 = vrot.slane %v93_v8, %v2781_v9 }
  0x89   :  { %1337 = vmatprep.subr.bf16.mxu0 %v2360_v14  ;;  %1380 = vmatprep.subr.bf16.mxu1 %v2363_v15  ;;  %v178_v14 = vrot.slane %v93_v8, %v177_v10 }
  0x8c   :  { %1338 = vmatpush1.bf16.msra.mxu0 %v2358_v16  ;;  %1381 = vmatpush1.bf16.msra.mxu1 %v2361_v17 }
  0x8d   :  { %1339 = vmatprep.subr.bf16.mxu0 %v2366_v18  ;;  %1382 = vmatprep.subr.bf16.mxu1 %v2369_v19 }
  0x90   :  { %1340 = vmatpush1.bf16.msra.mxu0 %v2364_v20  ;;  %1383 = vmatpush1.bf16.msra.mxu1 %v2367_v21 }
  0x91   :  { %1341 = vmatprep.subr.bf16.mxu0 %v2372_v22  ;;  %1384 = vmatprep.subr.bf16.mxu1 %v2375_v23 }
  0x94   :  { %1342 = vmatpush1.bf16.msra.mxu0 %v2370_v24  ;;  %1385 = vmatpush1.bf16.msra.mxu1 %v2373_v25 }
  0x95   :  { %1343 = vmatprep.subr.bf16.mxu0 %v2378_v26  ;;  %1386 = vmatprep.subr.bf16.mxu1 %v2381_v27 }
  0x98   :  { %1344 = vmatpush1.bf16.msra.mxu0 %v2376_v28  ;;  %1387 = vmatpush1.bf16.msra.mxu1 %v2379_v29 }
  0x99   :  { %1345 = vmatprep.subr.bf16.mxu0 %v2384_v30  ;;  %1388 = vmatprep.subr.bf16.mxu1 %v2387_v31 }
  0x9c   :  { %1346 = vmatpush1.bf16.msra.mxu0 %v2382_v32  ;;  %1389 = vmatpush1.bf16.msra.mxu1 %v2385_v33 }
  0x9d   :  { %1347 = vmatprep.subr.bf16.mxu0 %v2390_v34  ;;  %1390 = vmatprep.subr.bf16.mxu1 %v2393_v35 }
  0xa0   :  { %1348 = vmatpush2.bf16.msra.mxu0 %v2388_v36  ;;  %1391 = vmatpush2.bf16.msra.mxu1 %v2391_v37 }
  0xa1   :  { %1349 = vmatprep.subr.bf16.mxu0 %v2396_v38  ;;  %1392 = vmatprep.subr.bf16.mxu1 %v2399_v39 }
  0xa4   :  { %1350 = vmatpush2.bf16.msra.mxu0 %v2394_v40  ;;  %1393 = vmatpush2.bf16.msra.mxu1 %v2397_v41 }
  0xa5   :  { %1351 = vmatprep.subr.bf16.mxu0 %v2402_v42  ;;  %1394 = vmatprep.subr.bf16.mxu1 %v2405_v43 }
  0xa8   :  { %1352 = vmatpush2.bf16.msra.mxu0 %v2400_v44  ;;  %1395 = vmatpush2.bf16.msra.mxu1 %v2403_v45 }
  0xa9   :  { %1353 = vmatprep.subr.bf16.mxu0 %v2408_v46  ;;  %1396 = vmatprep.subr.bf16.mxu1 %v2411_v47 }
  0xac   :  { %1354 = vmatpush2.bf16.msra.mxu0 %v2406_v48  ;;  %1397 = vmatpush2.bf16.msra.mxu1 %v2409_v49 }
  0xad   :  { %1355 = vmatprep.subr.bf16.mxu0 %v2414_v50  ;;  %1398 = vmatprep.subr.bf16.mxu1 %v2417_v51 }
  0xb0   :  { %1356 = vmatpush2.bf16.msra.mxu0 %v2412_v52  ;;  %1399 = vmatpush2.bf16.msra.mxu1 %v2415_v53 }
  0xb1   :  { %1357 = vmatprep.subr.bf16.mxu0 %v2420_v54  ;;  %1400 = vmatprep.subr.bf16.mxu1 %v2423_v55 }
  0xb4   :  { %1358 = vmatpush2.bf16.msra.mxu0 %v2418_v56  ;;  %1401 = vmatpush2.bf16.msra.mxu1 %v2421_v57 }
  0xb5   :  { %1359 = vmatprep.subr.bf16.mxu0 %v2426_v58  ;;  %1402 = vmatprep.subr.bf16.mxu1 %v2429_v59 }
  0xb8   :  { %1360 = vmatpush2.bf16.msra.mxu0 %v2424_v60  ;;  %1403 = vmatpush2.bf16.msra.mxu1 %v2427_v61 }
  0xb9   :  { %1361 = vmatprep.subr.bf16.mxu0 %v2432_v63  ;;  %1404 = vmatprep.subr.bf16.mxu1 %v2435_v1 }
  0xbc   :  { %1362 = vmatpush2.bf16.msra.mxu0 %v2430_v62  ;;  %1405 = vmatpush2.bf16.msra.mxu1 %v2433_v0 }
  0xbd   :  { %2184 = vmatprep.subr.bf16.mxu0 %v2436_v2  ;;  %2206 = vmatprep.subr.bf16.mxu1 %v2437_v3 }
 0x13f   :  { %v547_v15 = vpop.f32.mrf.mxu0  ;;  %v590_v16 = vpop.f32.mrf.mxu1 }
 0x140   :  { %v2788_v17 = vadd.f32 %v547_v15, %v166_v11  ;;  %v2790_v18 = vadd.f32 %v590_v16, %v174_v12 }
 0x141   :  { %v549_v19 = vpop.f32.mrf.mxu0  ;;  %v592_v20 = vpop.f32.mrf.mxu1 }
 0x142   :  { %v599_v21 = vmul.f32 %v2788_v17, %v2788_v17  ;;  %v601_v22 = vmul.f32 %v2790_v18, %v2790_v18  ;;  %v2796_v23 = vadd.f32 %v549_v19, %v170_v13  ;;  %v2798_v24 = vadd.f32 %v592_v20, %v178_v14 }
 0x143   :  { %v551_v25 = vpop.f32.mrf.mxu0  ;;  %v594_v26 = vpop.f32.mrf.mxu1 }
 0x144   :  { %v607_v27 = vmul.f32 %v599_v21, %v2788_v17  ;;  %v609_v28 = vmul.f32 %v601_v22, %v2790_v18  ;;  %v600_v29 = vmul.f32 %v2796_v23, %v2796_v23  ;;  %v602_v30 = vmul.f32 %v2798_v24, %v2798_v24 }
 0x145   :  { %v2806_v31 = vadd.f32 %v551_v25, %v166_v11  ;;  %v2808_v32 = vadd.f32 %v594_v26, %v174_v12  ;;  %v553_v33 = vpop.f32.mrf.mxu0  ;;  %v596_v34 = vpop.f32.mrf.mxu1 }
 0x146   :  { %v615_v35 = vmul.f32 0.044715, %v607_v27  ;;  %v617_v36 = vmul.f32 0.044715, %v609_v28  ;;  %v608_v37 = vmul.f32 %v600_v29, %v2796_v23  ;;  %v610_v38 = vmul.f32 %v602_v30, %v2798_v24 }
 0x147   :  { %v603_v39 = vmul.f32 %v2806_v31, %v2806_v31  ;;  %v605_v40 = vmul.f32 %v2808_v32, %v2808_v32  ;;  %v2816_v41 = vadd.f32 %v553_v33, %v170_v13  ;;  %v2818_v42 = vadd.f32 %v596_v34, %v178_v14 }
 0x148   :  { %v623_v43 = vadd.f32 %v615_v35, %v2788_v17  ;;  %v625_v44 = vadd.f32 %v617_v36, %v2790_v18  ;;  %v616_v45 = vmul.f32 0.044715, %v608_v37  ;;  %v618_v46 = vmul.f32 0.044715, %v610_v38 }
 0x149   :  { %v611_v47 = vmul.f32 %v603_v39, %v2806_v31  ;;  %v613_v48 = vmul.f32 %v605_v40, %v2808_v32  ;;  %v604_v49 = vmul.f32 %v2816_v41, %v2816_v41  ;;  %v606_v50 = vmul.f32 %v2818_v42, %v2818_v42 }
 0x14a   :  { %v631_v51 = vmul.f32 0.7978846, %v623_v43  ;;  %v633_v52 = vmul.f32 0.7978846, %v625_v44  ;;  %v624_v53 = vadd.f32 %v616_v45, %v2796_v23  ;;  %v626_v54 = vadd.f32 %v618_v46, %v2798_v24 }
 0x14b   :  { %v619_v55 = vmul.f32 0.044715, %v611_v47  ;;  %v621_v56 = vmul.f32 0.044715, %v613_v48  ;;  %v612_v57 = vmul.f32 %v604_v49, %v2816_v41  ;;  %v614_v58 = vmul.f32 %v606_v50, %v2818_v42 }
 0x14c   :  { %2540 = vtanh.f32 %v631_v51  ;;  %v632_v59 = vmul.f32 0.7978846, %v624_v53  ;;  %v634_v60 = vmul.f32 0.7978846, %v626_v54 }
 0x14d   :  { %2542 = vtanh.f32 %v633_v52  ;;  %v627_v61 = vadd.f32 %v619_v55, %v2806_v31  ;;  %v629_v62 = vadd.f32 %v621_v56, %v2808_v32  ;;  %v620_v63 = vmul.f32 0.044715, %v612_v57  ;;  %v2438_v52 = vld [vmem:[#allocation8 + $0xb0] ss:$12 sps:$4 sm:$0xff]   ;;  %v2446_v55 = vld [vmem:[#allocation8 + $0x80] ss:$12 sps:$4 sm:$0xff]  }
 0x14e   :  { %2544 = vtanh.f32 %v632_v59  ;;  %v622_v0 = vmul.f32 0.044715, %v614_v58  ;;  %v2447_v56 = vld [vmem:[#allocation8 + $0x200] ss:$12 sps:$4 sm:$0xff]   ;;  %v2448_v57 = vld [vmem:[#allocation8 + $0x128] ss:$12 sps:$4 sm:$0xff]  }
 0x14f   :  { %2546 = vtanh.f32 %v634_v60  ;;  %v635_v1 = vmul.f32 0.7978846, %v627_v61  ;;  %v637_v2 = vmul.f32 0.7978846, %v629_v62  ;;  %v628_v3 = vadd.f32 %v620_v63, %v2816_v41  ;;  %v2449_v58 = vld [vmem:[#allocation8 + $0x2a8] ss:$12 sps:$4 sm:$0xff]  }
 0x150   :  { %v630_v4 = vadd.f32 %v622_v0, %v2818_v42  ;;  %v2450_v59 = vld [vmem:[#allocation8 + $0x68] ss:$12 sps:$4 sm:$0xff]   ;;  %v2452_v61 = vld [vmem:[#allocation8 + $0x110] ss:$12 sps:$4 sm:$0xff]  }
 0x151   :  { %2548 = vtanh.f32 %v635_v1  ;;  %v636_v8 = vmul.f32 0.7978846, %v628_v3  ;;  %v2451_v60 = vld [vmem:[#allocation8 + $0x1e8] ss:$12 sps:$4 sm:$0xff]   ;;  %v2453_v62 = vld [vmem:[#allocation8 + $0x290] ss:$12 sps:$4 sm:$0xff]  }
 0x152   :  { %2550 = vtanh.f32 %v637_v2  ;;  %v638_v10 = vmul.f32 0.7978846, %v630_v4  ;;  %v2454_v63 = vld [vmem:[#allocation8 + $0x50] ss:$12 sps:$4 sm:$0xff]   ;;  %v2456_v1 = vld [vmem:[#allocation8 + $0xf8] ss:$12 sps:$4 sm:$0xff]  }
 0x153   :  { %2552 = vtanh.f32 %v636_v8  ;;  %v2455_v0 = vld [vmem:[#allocation8 + $0x1d0] ss:$12 sps:$4 sm:$0xff]   ;;  %v2457_v2 = vld [vmem:[#allocation8 + $0x278] ss:$12 sps:$4 sm:$0xff]   ;;  %v2460_v8 = vld [vmem:[#allocation8 + $0xe0] ss:$12 sps:$4 sm:$0xff]  }
 0x154   :  { %2554 = vtanh.f32 %v638_v10  ;;  %v2458_v3 = vld [vmem:[#allocation8 + $0x38] ss:$12 sps:$4 sm:$0xff]   ;;  %v2461_v10 = vld [vmem:[#allocation8 + $0x260] ss:$12 sps:$4 sm:$0xff]  }
 0x155   :  { %v2459_v4 = vld [vmem:[#allocation8 + $0x1b8] ss:$12 sps:$4 sm:$0xff]  }
 0x159   :  { %v2541_v11 = vpop.eup %2540 }
 0x15a   :  { %v2543_v12 = vpop.eup %2542  ;;  %v647_v19 = vadd.f32 1.0, %v2541_v11  ;;  %v2462_v11 = vld [vmem:[#allocation8 + $0x20] ss:$12 sps:$4 sm:$0xff]  }
 0x15b   :  { %v2545_v13 = vpop.eup %2544  ;;  %v649_v22 = vadd.f32 1.0, %v2543_v12  ;;  %v2463_v12 = vld [vmem:[#allocation8 + $0x1a0] ss:$12 sps:$4 sm:$0xff]  }
 0x15c   :  { %v2547_v14 = vpop.eup %2546  ;;  %v648_v15 = vadd.f32 1.0, %v2545_v13  ;;  %v655_v34 = vmul.f32 0.5, %v647_v19  ;;  %v2464_v13 = vld [vmem:[#allocation8 + $0xc8] ss:$12 sps:$4 sm:$0xff]  }
 0x15d   :  { %v650_v20 = vadd.f32 1.0, %v2547_v14  ;;  %v657_v38 = vmul.f32 0.5, %v649_v22  ;;  %v2465_v14 = vld [vmem:[#allocation8 + $0x248] ss:$12 sps:$4 sm:$0xff]  }
 0x15e   :  { %v2549_v16 = vpop.eup %2548  ;;  %v656_v33 = vmul.f32 0.5, %v648_v15  ;;  %v663_v47 = vmul.f32 %v655_v34, %v2788_v17  ;;  %v2441_v17 = vld [vmem:[#allocation8 + $0x2d8] ss:$12 sps:$4 sm:$0xff]   ;;  %v2466_v15 = vld [vmem:[#allocation8 + $0x8] ss:$12 sps:$4 sm:$0xff]  }
 0x15f   :  { %v2551_v21 = vpop.eup %2550  ;;  %v651_v25 = vadd.f32 1.0, %v2549_v16  ;;  %v658_v37 = vmul.f32 0.5, %v650_v20  ;;  %v665_v50 = vmul.f32 %v657_v38, %v2790_v18  ;;  %v2443_v18 = vld [vmem:[#allocation8 + $0x218] ss:$12 sps:$4 sm:$0xff]   ;;  %v2467_v16 = vld [vmem:[#allocation8 + $0x188] ss:$12 sps:$4 sm:$0xff]  }
 0x160   :  { %v2553_v26 = vpop.eup %2552  ;;  %v653_v27 = vadd.f32 1.0, %v2551_v21  ;;  %v664_v45 = vmul.f32 %v656_v33, %v2796_v23  ;;  %v2440_v23 = vld [vmem:[#allocation8 + $0x158] ss:$12 sps:$4 sm:$0xff]   ;;  %v2470_v19 = vld [vmem:[#allocation10 + $0x74] ss:$8 sps:$4 sm:$0xff]  }
 0x161   :  { %v2555_v28 = vpop.eup %2554  ;;  %v659_v29 = vmul.f32 0.5, %v651_v25  ;;  %v652_v30 = vadd.f32 1.0, %v2553_v26  ;;  %v666_v48 = vmul.f32 %v658_v37, %v2798_v24  ;;  %v2442_v24 = vld [vmem:[#allocation8 + $0x98] ss:$12 sps:$4 sm:$0xff]   ;;  %v2471_v22 = vld [vmem:[#allocation10 + $0x60] ss:$8 sps:$4 sm:$0xff]  }
 0x162   :  { %v661_v35 = vmul.f32 0.5, %v653_v27  ;;  %v654_v36 = vadd.f32 1.0, %v2555_v28  ;;  %v2468_v20 = vld [vmem:[#allocation10 + $0x70] ss:$8 sps:$4 sm:$0xff]   ;;  %v2473_v21 = vld [vmem:[#allocation10 + $0x64] ss:$8 sps:$4 sm:$0xff]  }
 0x163   :  { %v660_v39 = vmul.f32 0.5, %v652_v30  ;;  %v667_v40 = vmul.f32 %v659_v29, %v2806_v31  ;;  %v2439_v31 = vld [vmem:[#allocation8 + $0x230] ss:$12 sps:$4 sm:$0xff]   ;;  %v2479_v27 = vld [vmem:[#allocation10 + $0x44] ss:$8 sps:$4 sm:$0xff]  }
 0x164   :  { %v662_v43 = vmul.f32 0.5, %v654_v36  ;;  %v669_v44 = vmul.f32 %v661_v35, %v2808_v32  ;;  %v2476_v25 = vld [vmem:[#allocation10 + $0x54] ss:$8 sps:$4 sm:$0xff]   ;;  %v2474_v26 = vld [vmem:[#allocation10 + $0x50] ss:$8 sps:$4 sm:$0xff]  }
 0x165   :  { %v668_v46 = vmul.f32 %v660_v39, %v2816_v41  ;;  %v2844_v54 = vpack.c.bf16 %v667_v40, %v663_v47  ;;  %v2444_v41 = vld [vmem:[#allocation8 + $0x140] ss:$12 sps:$4 sm:$0xff]   ;;  %v2482_v29 = vld [vmem:[#allocation10 + $0x34] ss:$8 sps:$4 sm:$0xff]   ;;  %v2480_v30 = vld [vmem:[#allocation10 + $0x30] ss:$8 sps:$4 sm:$0xff]  }
 0x166   :  { %v670_v49 = vmul.f32 %v662_v43, %v2818_v42  ;;  %v2846_v32 = vpack.c.bf16 %v669_v44, %v665_v50  ;;  %v2445_v42 = vld [vmem:[#allocation8 + $0x2c0] ss:$12 sps:$4 sm:$0xff]   ;;  %v2488_v35 = vld [vmem:[#allocation10 + $0x14] ss:$8 sps:$4 sm:$0xff]   ;;  %v2486_v36 = vld [vmem:[#allocation10 + $0x10] ss:$8 sps:$4 sm:$0xff]  }
 0x167   :  { %v672_v51 = vpack.c.bf16 %v668_v46, %v664_v45  ;;  %v2477_v28 = vld [vmem:[#allocation10 + $0x40] ss:$8 sps:$4 sm:$0xff]   ;;  %v2485_v33 = vld [vmem:[#allocation10 + $0x24] ss:$8 sps:$4 sm:$0xff]   ;;  %v2494_v39 = vld [vmem:[#allocation10 + $0xf4] ss:$8 sps:$4 sm:$0xff]  }
 0x168   :  { %v674_v53 = vpack.c.bf16 %v670_v49, %v666_v48  ;;  %v2483_v34 = vld [vmem:[#allocation10 + $0x20] ss:$8 sps:$4 sm:$0xff]   ;;  %v2491_v37 = vld [vmem:[#allocation10 + $0x4] ss:$8 sps:$4 sm:$0xff]   ;;  %v2492_v40 = vld [vmem:[#allocation10 + $0xf0] ss:$8 sps:$4 sm:$0xff]  }
 0x169   :  { %1363 = vmatprep.mubr.bf16.mxu0 %v672_v51  ;;  %v2489_v38 = vld [vmem:[#allocation10] ss:$8 sps:$4 sm:$0xff]   ;;  %v2497_v43 = vld [vmem:[#allocation10 + $0xe4] ss:$8 sps:$4 sm:$0xff]   ;;  %v2500_v45 = vld [vmem:[#allocation10 + $0xd4] ss:$8 sps:$4 sm:$0xff]  }
 0x16a   :  { %1406 = vmatprep.mubr.bf16.mxu1 %v674_v53  ;;  %1364 = vmatmul.mubr.bf16.vlgmr.msra.gmra.mxu0 %v2844_v54  ;;  %v2495_v44 = vld [vmem:[#allocation10 + $0xe0] ss:$8 sps:$4 sm:$0xff]   ;;  %v2498_v46 = vld [vmem:[#allocation10 + $0xd0] ss:$8 sps:$4 sm:$0xff]   ;;  %v2503_v47 = vld [vmem:[#allocation10 + $0xc4] ss:$8 sps:$4 sm:$0xff]  }
 0x16b   :  { %1407 = vmatmul.mubr.bf16.vlgmr.msra.gmra.mxu1 %v2846_v32  ;;  %2185 = vmatpush3.bf16.msra.mxu0 %v2438_v52  ;;  %v2501_v48 = vld [vmem:[#allocation10 + $0xc0] ss:$8 sps:$4 sm:$0xff]   ;;  %v2506_v49 = vld [vmem:[#allocation10 + $0xb4] ss:$8 sps:$4 sm:$0xff]   ;;  %v2504_v50 = vld [vmem:[#allocation10 + $0xb0] ss:$8 sps:$4 sm:$0xff]  }
 0x16c   :  { %2207 = vmatpush3.bf16.msra.mxu1 %v2439_v31  ;;  %1449 = vmatprep.mubr.bf16.mxu0 %v672_v51  ;;  %v2509_v51 = vld [vmem:[#allocation10 + $0xa4] ss:$8 sps:$4 sm:$0xff]   ;;  %v2507_v52 = vld [vmem:[#allocation10 + $0xa0] ss:$8 sps:$4 sm:$0xff]  }
 0x16d   :  { %1490 = vmatprep.mubr.bf16.mxu1 %v674_v53  ;;  %2186 = vmatprep.subr.bf16.mxu0 %v2440_v23  ;;  %v2512_v53 = vld [vmem:[#allocation10 + $0x94] ss:$8 sps:$4 sm:$0xff]   ;;  %v2515_v31 = vld [vmem:[#allocation10 + $0x84] ss:$8 sps:$4 sm:$0xff]  }
 0x16e   :  { %2208 = vmatprep.subr.bf16.mxu1 %v2441_v17  ;;  %v2518_v23 = vld [vmem:[#allocation10 + $0x174] ss:$8 sps:$4 sm:$0xff]   ;;  %v2516_v17 = vld [vmem:[#allocation10 + $0x170] ss:$8 sps:$4 sm:$0xff]  }
 0x16f   :  { %2187 = vmatpush3.bf16.msra.mxu0 %v2442_v24  ;;  %v2521_v24 = vld [vmem:[#allocation10 + $0x164] ss:$8 sps:$4 sm:$0xff]  }
 0x170   :  { %2209 = vmatpush3.bf16.msra.mxu1 %v2443_v18  ;;  %2188 = vmatprep.subr.bf16.mxu0 %v2444_v41  ;;  %v2519_v18 = vld [vmem:[#allocation10 + $0x160] ss:$8 sps:$4 sm:$0xff]   ;;  %v2524_v41 = vld [vmem:[#allocation10 + $0x154] ss:$8 sps:$4 sm:$0xff]  }
 0x171   :  { %2210 = vmatprep.subr.bf16.mxu1 %v2445_v42  ;;  %v2522_v42 = vld [vmem:[#allocation10 + $0x150] ss:$8 sps:$4 sm:$0xff]  }
 0x173   :  { %2189 = vmatpush3.bf16.msra.mxu0 %v2446_v55  ;;  %v2525_v55 = vld [vmem:[#allocation10 + $0x140] ss:$8 sps:$4 sm:$0xff]  }
 0x174   :  { %2211 = vmatpush3.bf16.msra.mxu1 %v2447_v56  ;;  %2190 = vmatprep.subr.bf16.mxu0 %v2448_v57  ;;  %v2527_v56 = vld [vmem:[#allocation10 + $0x144] ss:$8 sps:$4 sm:$0xff]   ;;  %v2530_v57 = vld [vmem:[#allocation10 + $0x134] ss:$8 sps:$4 sm:$0xff]  }
 0x175   :  { %2212 = vmatprep.subr.bf16.mxu1 %v2449_v58  ;;  %v2528_v58 = vld [vmem:[#allocation10 + $0x130] ss:$8 sps:$4 sm:$0xff]  }
 0x177   :  { %2191 = vmatpush3.bf16.msra.mxu0 %v2450_v59  ;;  %v2707_v59 = vmov 0  }
 0x178   :  { %2213 = vmatpush3.bf16.msra.mxu1 %v2451_v60  ;;  %2192 = vmatprep.subr.bf16.mxu0 %v2452_v61  ;;  %v2533_v60 = vld [vmem:[#allocation10 + $0x124] ss:$8 sps:$4 sm:$0xff]   ;;  %v2531_v61 = vld [vmem:[#allocation10 + $0x120] ss:$8 sps:$4 sm:$0xff]  }
 0x179   :  { %2214 = vmatprep.subr.bf16.mxu1 %v2453_v62  ;;  %v2536_v62 = vld [vmem:[#allocation10 + $0x114] ss:$8 sps:$4 sm:$0xff]  }
 0x17b   :  { %2193 = vmatpush3.bf16.msra.mxu0 %v2454_v63  ;;  %v2534_v63 = vld [vmem:[#allocation10 + $0x110] ss:$8 sps:$4 sm:$0xff]  }
 0x17c   :  { %2215 = vmatpush3.bf16.msra.mxu1 %v2455_v0  ;;  %2194 = vmatprep.subr.bf16.mxu0 %v2456_v1  ;;  %v2539_v0 = vld [vmem:[#allocation10 + $0x104] ss:$8 sps:$4 sm:$0xff]   ;;  %v2537_v1 = vld [vmem:[#allocation10 + $0x100] ss:$8 sps:$4 sm:$0xff]  }
 0x17d   :  { %2216 = vmatprep.subr.bf16.mxu1 %v2457_v2  ;;  %v94_v2 = vld [vmem:[%s2882_s5 + $0x4] sm:$0x7] }
 0x17f   :  { %2195 = vmatpush3.bf16.msra.mxu0 %v2458_v3  ;;  %v807_v3 = vrot.slane %v94_v2, %v2774_v6 }
 0x180   :  { %2217 = vmatpush3.bf16.msra.mxu1 %v2459_v4  ;;  %2196 = vmatprep.subr.bf16.mxu0 %v2460_v8  ;;  %v811_v4 = vrot.slane %v94_v2, %v2781_v9 }
 0x181   :  { %2218 = vmatprep.subr.bf16.mxu1 %v2461_v10 }
 0x183   :  { %2197 = vmatpush3.bf16.msra.mxu0 %v2462_v11 }
 0x184   :  { %2219 = vmatpush3.bf16.msra.mxu1 %v2463_v12  ;;  %2198 = vmatprep.subr.bf16.mxu0 %v2464_v13 }
 0x185   :  { %2220 = vmatprep.subr.bf16.mxu1 %v2465_v14 }
 0x187   :  { %2199 = vmatpush3.bf16.msra.mxu0 %v2466_v15 }
 0x188   :  { %2221 = vmatpush3.bf16.msra.mxu1 %v2467_v16  ;;  %1855 = vmatprep.subr.bf16.mxu0 %v2470_v19 }
 0x189   :  { %1898 = vmatprep.subr.bf16.mxu1 %v2518_v23 }
 0x18a   :  { %1450 = vmatmul.mubr.bf16.vlgmr.msra.gmra.mxu0 %v2844_v54  ;;  %v2510_v54 = vld [vmem:[#allocation10 + $0x90] ss:$8 sps:$4 sm:$0xff]  }
 0x18b   :  { %1491 = vmatmul.mubr.bf16.vlgmr.msra.gmra.mxu1 %v2846_v32  ;;  %1856 = vmatpush1.bf16.msra.mxu0 %v2468_v20  ;;  %v2513_v32 = vld [vmem:[#allocation10 + $0x80] ss:$8 sps:$4 sm:$0xff]  }
 0x18c   :  { %1857 = vmatprep.subr.bf16.mxu0 %v2473_v21  ;;  %1899 = vmatpush1.bf16.msra.mxu1 %v2516_v17 }
 0x18d   :  { %1900 = vmatprep.subr.bf16.mxu1 %v2521_v24  ;;  %1930 = vmatprep.mubr.bf16.mxu1 %v2707_v59 }
 0x18f   :  { %1858 = vmatpush1.bf16.msra.mxu0 %v2471_v22 }
 0x190   :  { %1859 = vmatprep.subr.bf16.mxu0 %v2476_v25  ;;  %1901 = vmatpush1.bf16.msra.mxu1 %v2519_v18 }
 0x191   :  { %1902 = vmatprep.subr.bf16.mxu1 %v2524_v41  ;;  %v815_v41 = vrot.slane %v94_v2, %v173_v7 }
 0x193   :  { %1860 = vmatpush1.bf16.msra.mxu0 %v2474_v26 }
 0x194   :  { %1861 = vmatprep.subr.bf16.mxu0 %v2479_v27  ;;  %1903 = vmatpush1.bf16.msra.mxu1 %v2522_v42 }
 0x195   :  { %1904 = vmatprep.subr.bf16.mxu1 %v2527_v56 }
 0x197   :  { %1862 = vmatpush1.bf16.msra.mxu0 %v2477_v28 }
 0x198   :  { %1863 = vmatprep.subr.bf16.mxu0 %v2482_v29  ;;  %1905 = vmatpush1.bf16.msra.mxu1 %v2525_v55 }
 0x199   :  { %1906 = vmatprep.subr.bf16.mxu1 %v2530_v57 }
 0x19b   :  { %1864 = vmatpush1.bf16.msra.mxu0 %v2480_v30 }
 0x19c   :  { %1865 = vmatprep.subr.bf16.mxu0 %v2485_v33  ;;  %1907 = vmatpush1.bf16.msra.mxu1 %v2528_v58 }
 0x19d   :  { %1908 = vmatprep.subr.bf16.mxu1 %v2533_v60 }
 0x19f   :  { %1866 = vmatpush1.bf16.msra.mxu0 %v2483_v34 }
 0x1a0   :  { %1867 = vmatprep.subr.bf16.mxu0 %v2488_v35  ;;  %1909 = vmatpush1.bf16.msra.mxu1 %v2531_v61 }
 0x1a1   :  { %1910 = vmatprep.subr.bf16.mxu1 %v2536_v62 }
 0x1a3   :  { %1868 = vmatpush1.bf16.msra.mxu0 %v2486_v36 }
 0x1a4   :  { %1869 = vmatprep.subr.bf16.mxu0 %v2491_v37  ;;  %1911 = vmatpush1.bf16.msra.mxu1 %v2534_v63 }
 0x1a5   :  { %1912 = vmatprep.subr.bf16.mxu1 %v2539_v0 }
 0x1a7   :  { %1870 = vmatpush1.bf16.msra.mxu0 %v2489_v38 }
 0x1a8   :  { %1871 = vmatprep.subr.bf16.mxu0 %v2494_v39  ;;  %1913 = vmatpush1.bf16.msra.mxu1 %v2537_v1 }
 0x1ab   :  { %1872 = vmatpush2.bf16.msra.mxu0 %v2492_v40 }
 0x1ac   :  { %1873 = vmatprep.subr.bf16.mxu0 %v2497_v43 }
 0x1af   :  { %1874 = vmatpush2.bf16.msra.mxu0 %v2495_v44 }
 0x1b0   :  { %1875 = vmatprep.subr.bf16.mxu0 %v2500_v45 }
 0x1b3   :  { %1876 = vmatpush2.bf16.msra.mxu0 %v2498_v46 }
 0x1b4   :  { %1877 = vmatprep.subr.bf16.mxu0 %v2503_v47 }
 0x1b7   :  { %1878 = vmatpush2.bf16.msra.mxu0 %v2501_v48 }
 0x1b8   :  { %1879 = vmatprep.subr.bf16.mxu0 %v2506_v49 }
 0x1bb   :  { %1880 = vmatpush2.bf16.msra.mxu0 %v2504_v50 }
 0x1bc   :  { %1881 = vmatprep.subr.bf16.mxu0 %v2509_v51 }
 0x1bf   :  { %1882 = vmatpush2.bf16.msra.mxu0 %v2507_v52 }
 0x1c0   :  { %1883 = vmatprep.subr.bf16.mxu0 %v2512_v53 }
 0x1c3   :  { %1884 = vmatpush2.bf16.msra.mxu0 %v2510_v54 }
 0x1c4   :  { %1885 = vmatprep.subr.bf16.mxu0 %v2515_v31 }
 0x1c7   :  { %1886 = vmatpush2.bf16.msra.mxu0 %v2513_v32 }
 0x22a   :  { %v1365_v8 = vpop.f32.mrf.mxu0 }
 0x22b   :  { %v1366_v10 = vadd.f32 %v1365_v8, %v807_v3  ;;  %v1408_v11 = vpop.f32.mrf.mxu1 }
 0x22c   :  { %v1367_v12 = vpop.f32.mrf.mxu0 }
 0x22d   :  { %v2857_v13 = vadd.f32 %v1408_v11, %v1366_v10  ;;  %v1368_v14 = vadd.f32 %v1367_v12, %v811_v4  ;;  %v1410_v15 = vpop.f32.mrf.mxu1 }
 0x22e   :  { %v1369_v16 = vpop.f32.mrf.mxu0 }
 0x22f   :  { %v1499_v19 = vmul.f32 %v2857_v13, %v2857_v13  ;;  %v1411_v20 = vadd.f32 %v1410_v15, %v1368_v14  ;;  %v1370_v21 = vadd.f32 %v1369_v16, %v807_v3  ;;  %v1412_v22 = vpop.f32.mrf.mxu1 }
 0x230   :  { %v1371_v25 = vpop.f32.mrf.mxu0 }
 0x231   :  { %v1505_v26 = vmul.f32 %v1499_v19, %v2857_v13  ;;  %v1500_v27 = vmul.f32 %v1411_v20, %v1411_v20  ;;  %v1413_v28 = vadd.f32 %v1412_v22, %v1370_v21  ;;  %v1372_v29 = vadd.f32 %v1371_v25, %v811_v4  ;;  %v1414_v30 = vpop.f32.mrf.mxu1 }
 0x233   :  { %v1511_v33 = vmul.f32 0.044715, %v1505_v26  ;;  %v1506_v34 = vmul.f32 %v1500_v27, %v1411_v20  ;;  %v1502_v35 = vmul.f32 %v1413_v28, %v1413_v28  ;;  %v1415_v36 = vadd.f32 %v1414_v30, %v1372_v29 }
 0x235   :  { %v1517_v37 = vadd.f32 %v1511_v33, %v2857_v13  ;;  %v1512_v38 = vmul.f32 0.044715, %v1506_v34  ;;  %v1508_v39 = vmul.f32 %v1502_v35, %v1413_v28  ;;  %v1503_v40 = vmul.f32 %v1415_v36, %v1415_v36 }
 0x237   :  { %v1523_v43 = vmul.f32 0.7978846, %v1517_v37  ;;  %v1518_v44 = vadd.f32 %v1512_v38, %v1411_v20  ;;  %v1514_v45 = vmul.f32 0.044715, %v1508_v39  ;;  %v1509_v46 = vmul.f32 %v1503_v40, %v1415_v36 }
 0x239   :  { %v1524_v47 = vmul.f32 0.7978846, %v1518_v44  ;;  %v1520_v48 = vadd.f32 %v1514_v45, %v1413_v28  ;;  %v1515_v49 = vmul.f32 0.044715, %v1509_v46  ;;  %2556 = vtanh.f32 %v1523_v43  ;;  %v95_v46 = vld [vmem:[%s2882_s5 + $0x7] sm:$0x3] }
 0x23a   :  { %s2708_s5 = smov [#allocation11]  }
 0x23b   :  { %2558 = vtanh.f32 %v1524_v47  ;;  %v1526_v50 = vmul.f32 0.7978846, %v1520_v48  ;;  %v1521_v51 = vadd.f32 %v1515_v49, %v1415_v36  ;;  %v1608_v48 = vrot.slane %v95_v46, %v2774_v6  ;;  %v1941_v49 = vld [vmem:[#allocation5] sm:$0xff]  ;;  %s1960_s29 = sshll.u32 %s2708_s5, 4  ;;  %s1961_s29 = int_to_ptr.vmem [resolvable:$true] %s1960_s29 }
 0x23c   :  { %s2668_s30 = scalar_lea.vmem %s1961_s29, 512  ;;  %p2673_p12 = scmp.lt.s32.totalorder %s1961_s29, %s1961_s29 }
 0x23d   :  { %2560 = vtanh.f32 %v1526_v50  ;;  %v1527_v52 = vmul.f32 0.7978846, %v1521_v51  ;;  %v1612_v50 = vrot.slane %v95_v46, %v2781_v9  ;;  %p2669_p11 = scmp.ne.s32.totalorder %s1961_s29, %s2668_s30  ;;  %p2674_p13 = scmp.lt.s32.totalorder %s2668_s30, %s2668_s30 }
 0x23f   :  { %2562 = vtanh.f32 %v1527_v52  ;;  %p2675_p0 = por %p2674_p13, %p2673_p12 }
 0x241   :  { %p2676_p1 = pnand %p2675_p0, %p2669_p11 }
 0x246   :  { %v2557_v53 = vpop.eup %2556 }
 0x247   :  { %v1535_v23 = vadd.f32 1.0, %v2557_v53  ;;  %v1943_v53 = vunpack.c.l.bf16 %v1941_v49 }
 0x248   :  { %v2559_v54 = vpop.eup %2558 }
 0x249   :  { %v1536_v31 = vadd.f32 1.0, %v2559_v54  ;;  %v1541_v61 = vmul.f32 0.5, %v1535_v23 }
 0x24a   :  { %v2561_v32 = vpop.eup %2560  ;;  %v2200_v17 = vpop.f32.mrf.mxu0 }
 0x24b   :  { %v1538_v24 = vadd.f32 1.0, %v2561_v32  ;;  %v2222_v18 = vpop.f32.mrf.mxu1  ;;  %v1542_v60 = vmul.f32 0.5, %v1536_v31  ;;  %v1547_v2 = vmul.f32 %v1541_v61, %v2857_v13  ;;  %v1942_v31 = vld [vmem:[#allocation5 + $0x8] sm:$0xff] }
 0x24c   :  { %v2563_v42 = vpop.eup %2562  ;;  %v2201_v55 = vpop.f32.mrf.mxu0  ;;  %v1946_v9 = vunpack.c.h.bf16 %v1942_v31 }
 0x24d   :  { %v1544_v56 = vmul.f32 0.5, %v1538_v24  ;;  %v2202_v57 = vadd.f32 %v2201_v55, %v2200_v17  ;;  %v2223_v58 = vpop.f32.mrf.mxu1  ;;  %v1539_v59 = vadd.f32 1.0, %v2563_v42  ;;  %v1548_v5 = vmul.f32 %v1542_v60, %v1411_v20 }
 0x24e   :  { %v2203_v62 = vpop.f32.mrf.mxu0  ;;  %v2224_v0 = vadd.f32 %v2223_v58, %v2222_v18  ;;  %v1944_v17 = vunpack.c.h.bf16 %v1941_v49 }
 0x24f   :  { %v1452_v63 = vadd.f32 %v2202_v57, %v815_v41  ;;  %v2225_v1 = vpop.f32.mrf.mxu1  ;;  %v1545_v3 = vmul.f32 0.5, %v1539_v59  ;;  %v1550_v4 = vmul.f32 %v1544_v56, %v1413_v28  ;;  %v1945_v56 = vunpack.c.l.bf16 %v1942_v31 }
 0x250   :  { %v2204_v8 = vpop.f32.mrf.mxu0 }
 0x251   :  { %v1493_v10 = vadd.f32 %v2224_v0, %v1452_v63  ;;  %v2205_v11 = vadd.f32 %v2204_v8, %v2203_v62  ;;  %v2226_v12 = vpop.f32.mrf.mxu1  ;;  %v1551_v7 = vmul.f32 %v1545_v3, %v1415_v36  ;;  %v1553_v21 = vpack.c.bf16 %v1550_v4, %v1547_v2 }
 0x252   :  { %v2227_v16 = vadd.f32 %v2226_v12, %v2225_v1 }
 0x253   :  { %v1501_v14 = vmul.f32 %v1493_v10, %v1493_v10  ;;  %v1455_v15 = vadd.f32 %v2205_v11, %v815_v41  ;;  %v1554_v19 = vpack.c.bf16 %v1551_v7, %v1548_v5 }
 0x255   :  { %v1507_v22 = vmul.f32 %v1501_v14, %v1493_v10  ;;  %v1496_v25 = vadd.f32 %v2227_v16, %v1455_v15  ;;  %1887 = vmatprep.mubr.bf16.mxu0 %v1554_v19 }
 0x256   :  { %1888 = vmatmul.mubr.bf16.vlgmr.msra.gmra.mxu0 %v1553_v21 }
 0x257   :  { %v1513_v26 = vmul.f32 0.044715, %v1507_v22  ;;  %v1504_v27 = vmul.f32 %v1496_v25, %v1496_v25 }
 0x259   :  { %v1519_v28 = vadd.f32 %v1513_v26, %v1493_v10  ;;  %v1510_v29 = vmul.f32 %v1504_v27, %v1496_v25 }
 0x25b   :  { %v1525_v30 = vmul.f32 0.7978846, %v1519_v28  ;;  %v1516_v33 = vmul.f32 0.044715, %v1510_v29 }
 0x25d   :  { %2564 = vtanh.f32 %v1525_v30  ;;  %v1522_v20 = vadd.f32 %v1516_v33, %v1496_v25 }
 0x25f   :  { %v1528_v34 = vmul.f32 0.7978846, %v1522_v20 }
 0x261   :  { %2566 = vtanh.f32 %v1528_v34 }
 0x26a   :  { %v2565_v13 = vpop.eup %2564 }
 0x26b   :  { %v1537_v35 = vadd.f32 1.0, %v2565_v13 }
 0x26d   :  { %v1543_v38 = vmul.f32 0.5, %v1537_v35 }
 0x26e   :  { %v2567_v36 = vpop.eup %2566 }
 0x26f   :  { %v1540_v37 = vadd.f32 1.0, %v2567_v36  ;;  %v1549_v40 = vmul.f32 %v1543_v38, %v1493_v10 }
 0x271   :  { %v1546_v39 = vmul.f32 0.5, %v1540_v37 }
 0x273   :  { %v1552_v43 = vmul.f32 %v1546_v39, %v1496_v25 }
 0x275   :  { %v1555_v44 = vpack.c.bf16 %v1552_v43, %v1549_v40 }
 0x277   :  { %1931 = vmatmul.mubr.bf16.vlgmr.msra.gmra.mxu1 %v1555_v44 }
 0x316   :  { %v1889_v45 = vpop.f32.mrf.mxu0 }
 0x317   :  { %v1890_v52 = vadd.f32 %v1889_v45, %v1608_v48 }
 0x318   :  { %v1891_v47 = vpop.f32.mrf.mxu0 }
 0x319   :  { %v1892_v32 = vadd.f32 %v1891_v47, %v1612_v50 }
 0x31a   :  { %v1893_v51 = vpop.f32.mrf.mxu0 }
 0x31b   :  { %v1894_v41 = vadd.f32 %v1893_v51, %v1608_v48 }
 0x31c   :  { %v1895_v24 = vpop.f32.mrf.mxu0 }
 0x31d   :  { %v1896_v58 = vadd.f32 %v1895_v24, %v1612_v50 }
 0x337   :  { %v1932_v54 = vpop.f32.mrf.mxu1 }
 0x338   :  { %v1933_v23 = vadd.f32 %v1932_v54, %v1890_v52 }
 0x339   :  { %v1934_v18 = vpop.f32.mrf.mxu1 }
 0x33a   :  { %v1947_v42 = vmul.f32 %v1943_v53, %v1933_v23  ;;  %v1935_v55 = vadd.f32 %v1934_v18, %v1892_v32 }
 0x33b   :  { %v1936_v57 = vpop.f32.mrf.mxu1 }
 0x33c   :  { %1951 = vst [vmem:[#allocation11] sm:$0xff] %v1947_v42  ;;  %v1948_v6 = vmul.f32 %v1944_v17, %v1935_v55  ;;  %v1937_v59 = vadd.f32 %v1936_v57, %v1894_v41 }
 0x33d   :  { %v1938_v60 = vpop.f32.mrf.mxu1 }
 0x33e   :  { %1952 = vst [vmem:[#allocation11 + $0x8] sm:$0xff] %v1948_v6  ;;  %v1949_v61 = vmul.f32 %v1945_v56, %v1937_v59  ;;  %v1939_v62 = vadd.f32 %v1938_v60, %v1896_v58 }
 0x340   :  { %1953 = vst [vmem:[#allocation11 + $0x10] sm:$0xff] %v1949_v61  ;;  %v1950_v63 = vmul.f32 %v1946_v9, %v1939_v62 }
 0x342   :  { %1954 = vst [vmem:[#allocation11 + $0x18] sm:$0xff] %v1950_v63 }
 0x343   :  { %2679 = shalt.err (!%p2676_p1)
}
 0x344   :  { %1966 = dma.vmem_to_hbm [thread:$0]  %s1961_s29, 512, %s2883_s6, [#allocation4], %s2704_s17, %s2704_s17, %s2705_s18  }
 0x345   :  { %2694 = dma.done.wait [#allocation4], 512  }
 0x346   :  { %2695 = vsyncadd [#allocation4], 4294966784 }
 0x347   :  { %1970 = vsyncpa [#allocation3], 1 }
 0x348   :  { %1971 = vsyncpa [#allocation6], 1 }
 0x349   :  { %1972 = vsyncpa [#allocation9], 1 }
 0x34a   :  { %1973 = vsyncpa [#allocation4], 1 }

</bundles_post_ra>
